<compile_context>
chip_gen: v5e
topology: v5e:2x2
jax: 0.10.0
libtpu: 0.0.40
codegen_flags: <defaults>
</compile_context>

<pallas_src>
import functools

import jax
import jax.numpy as jnp
from jax.experimental import pallas as pl
from jax.experimental.pallas import tpu as pltpu


def _round_up(a, b):
    return pl.cdiv(a, b) * b


def highway_kernel(x_ref, w_ref, b_ref, o_ref):
    E = o_ref.shape[-1]

    # Residual path stays in f32 on the VPU.
    x_f32 = x_ref[...].astype(jnp.float32)
    # MXU path: feed the matrix unit at the weight dtype (bf16 when the fused
    # weight slab is bf16) and accumulate in f32.
    x_mx = x_ref[...].astype(w_ref.dtype)

    # One fused matmul: (TM, E) @ (E, 2E) -> (TM, 2E), f32 accumulate.
    y = jnp.dot(x_mx, w_ref[...], preferred_element_type=jnp.float32)
    y = y + b_ref[...].astype(jnp.float32)

    # Split fused output: first E lanes = projection branch, last E = gate branch.
    proj = jnp.maximum(y[:, :E], 0.0)   # relu    (VPU)
    gate = jax.nn.sigmoid(y[:, E:])     # sigmoid (EUP)

    # Highway combine: x + gate * (proj - x)  == gate*proj + (1-gate)*x
    o_ref[...] = (x_f32 + gate * (proj - x_f32)).astype(o_ref.dtype)


def fuse_highway_params(w_proj, b_proj, w_gate, b_gate, *, weights_dtype=None,
                        lane=128):
    """Pad params to a lane-aligned E_pad (multiple of 128) and fuse the two
    linear layers into one (E_pad, 2*E_pad) weight and one (1, 2*E_pad) bias.

    Call this ONCE (outside the per-step / jit path) so the concatenate + pad
    is not paid on every forward call.
    """
    E = w_proj.shape[0]
    E_pad = _round_up(E, lane)
    pad2 = ((0, E_pad - E), (0, E_pad - E))
    pad1 = ((0, E_pad - E),)

    wp = jnp.pad(w_proj, pad2)
    wg = jnp.pad(w_gate, pad2)
    bp = jnp.pad(b_proj, pad1)
    bg = jnp.pad(b_gate, pad1)

    w_fused = jnp.concatenate([wp, wg], axis=1)                 # (E_pad, 2*E_pad)
    b_fused = jnp.concatenate([bp, bg]).reshape(1, 2 * E_pad)   # (1, 2*E_pad)
    if weights_dtype is not None:
        w_fused = w_fused.astype(weights_dtype)
    return w_fused, b_fused


def highway_fused(x, w_fused, b_fused, *, tm=512):
    """Highway forward with pre-fused, lane-padded parameters.

    x:        (M, E)
    w_fused:  (E_pad, 2*E_pad)  from fuse_highway_params (E_pad % 128 == 0)
    b_fused:  (1, 2*E_pad)
    tm:       max row-tile size (rounded to a multiple of 8).
    """
    M, E = x.shape
    E_pad = w_fused.shape[0]
    assert w_fused.shape == (E_pad, 2 * E_pad)
    assert b_fused.shape == (1, 2 * E_pad)
    assert E <= E_pad and E_pad % 128 == 0

    # --- Row tile selection -------------------------------------------------
    m8 = _round_up(M, 8)
    tm_cap = max(8, min(int(tm), m8))
    # Ensure >= 2 grid steps when M allows it so dimension_semantics="parallel"
    # can shard rows across v7x's two TensorCores (harmless on v5e/v6e).
    if m8 >= 16 and pl.cdiv(m8, tm_cap) < 2:
        tm_cap = _round_up(pl.cdiv(m8, 2), 8)
    n_steps = pl.cdiv(m8, tm_cap)
    # Given the step count, shrink tm to minimize zero-padded rows.
    tm_sel = _round_up(pl.cdiv(m8, n_steps), 8)
    m_pad = tm_sel * n_steps

    x_p = x
    if m_pad != M or E_pad != E:
        x_p = jnp.pad(x, ((0, m_pad - M), (0, E_pad - E)))

    # --- VMEM budget & cost estimate ----------------------------------------
    itemsize = jnp.dtype(x.dtype).itemsize
    w_bytes = w_fused.size * jnp.dtype(w_fused.dtype).itemsize
    b_bytes = b_fused.size * jnp.dtype(b_fused.dtype).itemsize
    tile_bytes = tm_sel * E_pad * itemsize
    working_set = (
        w_bytes + b_bytes            # single-buffered resident weight/bias
        + 2 * tile_bytes             # double-buffered x tile
        + 2 * tile_bytes             # double-buffered out tile
        + tm_sel * 2 * E_pad * 4     # (TM, 2E) f32 matmul intermediate
        + 3 * tm_sel * E_pad * 4     # proj / gate / combine f32 temporaries
    )
    vmem_limit = int(min(max(2 * working_set, 32 << 20), 100 << 20))

    cost = pl.CostEstimate(
        flops=2 * m_pad * E_pad * (2 * E_pad) + 6 * m_pad * E_pad,
        transcendentals=m_pad * E_pad,                       # sigmoid
        bytes_accessed=2 * m_pad * E_pad * itemsize + w_bytes + b_bytes,
    )

    out = pl.pallas_call(
        highway_kernel,
        out_shape=jax.ShapeDtypeStruct((m_pad, E_pad), x.dtype),
        grid=(n_steps,),
        in_specs=[
            # x tile: pipelined (default double buffering) over the row grid.
            pl.BlockSpec((tm_sel, E_pad), lambda i: (i, 0)),
            # Fused weight: grid-invariant -> keep one resident copy only.
            pl.BlockSpec((E_pad, 2 * E_pad), lambda i: (0, 0),
                         pipeline_mode=pl.Buffered(1)),
            # Fused bias: grid-invariant, single-buffered.
            pl.BlockSpec((1, 2 * E_pad), lambda i: (0, 0),
                         pipeline_mode=pl.Buffered(1)),
        ],
        out_specs=pl.BlockSpec((tm_sel, E_pad), lambda i: (i, 0)),
        compiler_params=pltpu.CompilerParams(
            dimension_semantics=("parallel",),
            vmem_limit_bytes=vmem_limit,
        ),
        cost_estimate=cost,
    )(x_p, w_fused, b_fused)

    if m_pad != M or E_pad != E:
        out = out[:M, :E]
    return out


def highway(x, w_proj, b_proj, w_gate, b_gate, *, tm=512, weights_dtype=None):
    """Convenience one-shot API (fuses params on every call; prefer
    fuse_highway_params + highway_fused when weights are reused)."""
    w_fused, b_fused = fuse_highway_params(
        w_proj, b_proj, w_gate, b_gate, weights_dtype=weights_dtype)
    return highway_fused(x, w_fused, b_fused, tm=tm)


def highway_ref(x, w_proj, b_proj, w_gate, b_gate):
    """Pure-JAX reference matching the PyTorch forward."""
    proj = jax.nn.relu(x @ w_proj + b_proj)
    gate = jax.nn.sigmoid(x @ w_gate + b_gate)
    return gate * proj + (1.0 - gate) * x


if __name__ == "__main__":
    # Small shapes consistent with the module: batch=8, word_embed_size=32.
    B, E = 8, 32
    key = jax.random.PRNGKey(0)
    kx, kwp, kbp, kwg, kbg = jax.random.split(key, 5)

    x = jax.random.normal(kx, (B, E), dtype=jnp.float32)

    # Deterministic param init (kaiming-uniform-ish scale, like nn.Linear default).
    bound = 1.0 / (E ** 0.5)
    w_proj = jax.random.uniform(kwp, (E, E), jnp.float32, -bound, bound)  # (in, out)
    b_proj = jax.random.uniform(kbp, (E,), jnp.float32, -bound, bound)
    w_gate = jax.random.uniform(kwg, (E, E), jnp.float32, -bound, bound)  # (in, out)
    b_gate = jax.random.uniform(kbg, (E,), jnp.float32, -bound, bound)

    # Fuse + lane-pad the params ONCE (hoisted out of the jitted forward path).
    w_fused, b_fused = fuse_highway_params(w_proj, b_proj, w_gate, b_gate)
    w_fused = jax.block_until_ready(w_fused)
    b_fused = jax.block_until_ready(b_fused)

    fn = jax.jit(functools.partial(highway_fused, tm=512))
    out = jax.block_until_ready(fn(x, w_fused, b_fused))

    ref = highway_ref(x, w_proj, b_proj, w_gate, b_gate)
    assert out.shape == (B, E)
    assert jnp.allclose(out, ref, atol=1e-5, rtol=1e-5), "mismatch vs reference"

    print("KERNEL_OK")
</pallas_src>

<mosaic_0001>
module attributes {stable_mosaic.version = 11 : i64} {
  func.func @highway_kernel(%arg0: i32, %arg1: memref<8x128xf32, #tpu.memory_space<vmem>>, %arg2: memref<128x256xf32, #tpu.memory_space<vmem>>, %arg3: memref<1x256xf32, #tpu.memory_space<vmem>>, %arg4: memref<8x128xf32, #tpu.memory_space<vmem>>) attributes {dimension_semantics = [#tpu.dimension_semantics<parallel>], iteration_bounds = array<i64: 1>, scalar_prefetch = 0 : i64, scratch_operands = 0 : i64, tpu.core_type = #tpu.core_type<tc>, window_params = [{transform_indices = @transform_0, window_bounds = array<i64: 8, 128>}, {pipeline_mode = #tpu.pipeline_mode<synchronous>, transform_indices = @transform_1, window_bounds = array<i64: 128, 256>}, {pipeline_mode = #tpu.pipeline_mode<synchronous>, transform_indices = @transform_2, window_bounds = array<i64: 1, 256>}, {transform_indices = @transform_3, window_bounds = array<i64: 8, 128>}]} {
    %c0 = arith.constant 0 : index
    %c0_0 = arith.constant 0 : index
    %0 = vector.load %arg1[%c0, %c0_0] : memref<8x128xf32, #tpu.memory_space<vmem>>, vector<8x128xf32>
    %c0_1 = arith.constant 0 : index
    %c0_2 = arith.constant 0 : index
    %1 = vector.load %arg1[%c0_1, %c0_2] : memref<8x128xf32, #tpu.memory_space<vmem>>, vector<8x128xf32>
    %c0_3 = arith.constant 0 : index
    %c0_4 = arith.constant 0 : index
    %2 = vector.load %arg2[%c0_3, %c0_4] : memref<128x256xf32, #tpu.memory_space<vmem>>, vector<128x256xf32>
    %cst = arith.constant dense<0.000000e+00> : vector<8x256xf32>
    %3 = tpu.matmul %1, %2, %cst {dimension_numbers = #tpu.dot_dimension_numbers<[1], [0], [0], [1], [0, 0, 1, 1], [], []>} : vector<8x128xf32>, vector<128x256xf32>, vector<8x256xf32> -> vector<8x256xf32>
    %c0_5 = arith.constant 0 : index
    %c0_6 = arith.constant 0 : index
    %4 = vector.load %arg3[%c0_5, %c0_6] : memref<1x256xf32, #tpu.memory_space<vmem>>, vector<1x256xf32>
    %5 = vector.broadcast %4 : vector<1x256xf32> to vector<8x256xf32>
    %6 = arith.addf %3, %5 : vector<8x256xf32>
    %7 = vector.extract_strided_slice %6 {offsets = [0, 0], sizes = [8, 128], strides = [1, 1]} : vector<8x256xf32> to vector<8x128xf32>
    %cst_7 = arith.constant 0.000000e+00 : f32
    %8 = vector.broadcast %cst_7 : f32 to vector<8x128xf32>
    %9 = arith.maximumf %7, %8 : vector<8x128xf32>
    %10 = vector.extract_strided_slice %6 {offsets = [0, 128], sizes = [8, 128], strides = [1, 1]} : vector<8x256xf32> to vector<8x128xf32>
    %11 = arith.negf %10 : vector<8x128xf32>
    %12 = math.exp %11 : vector<8x128xf32>
    %cst_8 = arith.constant 1.000000e+00 : f32
    %13 = vector.broadcast %cst_8 : f32 to vector<8x128xf32>
    %14 = arith.addf %13, %12 : vector<8x128xf32>
    %15 = arith.divf %13, %14 : vector<8x128xf32>
    %16 = arith.subf %9, %0 : vector<8x128xf32>
    %17 = arith.mulf %15, %16 : vector<8x128xf32>
    %18 = arith.addf %0, %17 : vector<8x128xf32>
    %c0_9 = arith.constant 0 : index
    %c0_10 = arith.constant 0 : index
    %19 = vector.load %arg4[%c0_9, %c0_10] : memref<8x128xf32, #tpu.memory_space<vmem>>, vector<8x128xf32>
    tpu.vector_store %arg4[%c0_9, %c0_10], %18 {strides = array<i32>} : memref<8x128xf32, #tpu.memory_space<vmem>>, vector<8x128xf32>,
    return
  }
  func.func @transform_0(%arg0: i32) -> (i32, i32) {
    %c0_i32 = arith.constant 0 : i32
    %c0_i32_0 = arith.constant 0 : i32
    return %arg0, %c0_i32 : i32, i32
  }
  func.func @transform_1(%arg0: i32) -> (i32, i32) {
    %c0_i32 = arith.constant 0 : i32
    %c0_i32_0 = arith.constant 0 : i32
    %c0_i32_1 = arith.constant 0 : i32
    return %c0_i32, %c0_i32_0 : i32, i32
  }
  func.func @transform_2(%arg0: i32) -> (i32, i32) {
    %c0_i32 = arith.constant 0 : i32
    %c0_i32_0 = arith.constant 0 : i32
    %c0_i32_1 = arith.constant 0 : i32
    return %c0_i32, %c0_i32_0 : i32, i32
  }
  func.func @transform_3(%arg0: i32) -> (i32, i32) {
    %c0_i32 = arith.constant 0 : i32
    %c0_i32_0 = arith.constant 0 : i32
    return %arg0, %c0_i32 : i32, i32
  }
}

</mosaic_0001>

<bundles_post_ra>
// kernel: highway_fused.1
= control target key start
LH: loop header
LB: loop body
LE: loop exit
PB: predicated region body
PF: predicated region fallthrough
CT: control target
= control target key end

     0   :  { %8 = vsyncpa [#allocation3], 0  ;;  %s248_s0 = inlined_call_operand.vmem [shape: f32[8,128], index: 0, kind: input, shape index: {}]   ;;  %s249_s1 = inlined_call_operand.hbm [shape: f32[128,256], index: 1, kind: input, shape index: {}]   ;;  %s250_s2 = inlined_call_operand.vmem [shape: f32[1,256], index: 2, kind: input, shape index: {}]   ;;  %s251_s3 = inlined_call_operand.hbm [shape: f32[8,128], index: 3, kind: output, shape index: {}]  }
   0x1   :  { %9 = vsyncpa [#allocation4], 0  ;;  %s16_s14 = sshll.u32 %s249_s1, 4  ;;  %s212_s15 = smov [#allocation2]   ;;  %s17_s14 = int_to_ptr.hbm [resolvable:$true] %s16_s14 }
   0x2   :  { %s18_s16 = sshll.u32 %s212_s15, 4  ;;  %s213_s17 = smov 256   ;;  %s19_s16 = int_to_ptr.vmem [resolvable:$true] %s18_s16 }
   0x3   :  { %s214_s18 = smov 16  }
   0x4   :  { %24 = dma.hbm_to_vmem [thread:$0]  %s17_s14, 4096, %s19_s16, [#allocation3], %s213_s17, %s213_s17, %s214_s18  }
   0x5   :  { %208 = dma.done.wait [#allocation3], 4096  }
   0x6   :  { %209 = vsyncadd [#allocation3], 4294963200  ;;  %v63_v0 = vld [vmem:[#allocation2 + $0xf8] sm:$0xff]  ;;  %v61_v1 = vld [vmem:[#allocation2 + $0xe8] sm:$0xff]  ;;  %s141_s24 = sshll.u32 %s251_s3, 4  ;;  %s142_s24 = int_to_ptr.hbm [resolvable:$true] %s141_s24 }
   0x7   :  { %90 = vmatpush.msra.mxu1 %v63_v0  ;;  %v59_v2 = vld [vmem:[#allocation2 + $0xd8] sm:$0xff]  ;;  %v57_v3 = vld [vmem:[#allocation2 + $0xc8] sm:$0xff]  ;;  %v62_v4 = vld [vmem:[#allocation2 + $0xf0] sm:$0xff] }
   0x8   :  { %v60_v5 = vld [vmem:[#allocation2 + $0xe0] sm:$0xff]  ;;  %70 = vmatpush.msra.mxu0 %v62_v4  ;;  %v55_v6 = vld [vmem:[#allocation2 + $0xb8] sm:$0xff]  ;;  %v58_v7 = vld [vmem:[#allocation2 + $0xd0] sm:$0xff] }
   0x9   :  { %91 = vmatpush.msra.mxu1 %v61_v1  ;;  %v53_v8 = vld [vmem:[#allocation2 + $0xa8] sm:$0xff]  ;;  %v56_v9 = vld [vmem:[#allocation2 + $0xc0] sm:$0xff]  ;;  %v51_v10 = vld [vmem:[#allocation2 + $0x98] sm:$0xff] }
   0xa   :  { %71 = vmatpush.msra.mxu0 %v60_v5  ;;  %v54_v11 = vld [vmem:[#allocation2 + $0xb0] sm:$0xff]  ;;  %v49_v12 = vld [vmem:[#allocation2 + $0x88] sm:$0xff]  ;;  %v52_v13 = vld [vmem:[#allocation2 + $0xa0] sm:$0xff] }
   0xb   :  { %92 = vmatpush.msra.mxu1 %v59_v2  ;;  %v47_v14 = vld [vmem:[#allocation2 + $0x78] sm:$0xff]  ;;  %v50_v15 = vld [vmem:[#allocation2 + $0x90] sm:$0xff]  ;;  %v45_v16 = vld [vmem:[#allocation2 + $0x68] sm:$0xff] }
   0xc   :  { %72 = vmatpush.msra.mxu0 %v58_v7  ;;  %v48_v17 = vld [vmem:[#allocation2 + $0x80] sm:$0xff]  ;;  %v43_v18 = vld [vmem:[#allocation2 + $0x58] sm:$0xff]  ;;  %v46_v19 = vld [vmem:[#allocation2 + $0x70] sm:$0xff] }
   0xd   :  { %93 = vmatpush.msra.mxu1 %v57_v3  ;;  %v41_v20 = vld [vmem:[#allocation2 + $0x48] sm:$0xff]  ;;  %v44_v21 = vld [vmem:[#allocation2 + $0x60] sm:$0xff]  ;;  %v39_v22 = vld [vmem:[#allocation2 + $0x38] sm:$0xff] }
   0xe   :  { %73 = vmatpush.msra.mxu0 %v56_v9  ;;  %v42_v23 = vld [vmem:[#allocation2 + $0x50] sm:$0xff]  ;;  %v37_v24 = vld [vmem:[#allocation2 + $0x28] sm:$0xff]  ;;  %v40_v25 = vld [vmem:[#allocation2 + $0x40] sm:$0xff] }
   0xf   :  { %94 = vmatpush.msra.mxu1 %v55_v6  ;;  %v35_v26 = vld [vmem:[#allocation2 + $0x18] sm:$0xff]  ;;  %v38_v27 = vld [vmem:[#allocation2 + $0x30] sm:$0xff]  ;;  %v33_v28 = vld [vmem:[#allocation2 + $0x8] sm:$0xff] }
  0x10   :  { %74 = vmatpush.msra.mxu0 %v54_v11  ;;  %v36_v29 = vld [vmem:[#allocation2 + $0x20] sm:$0xff]  ;;  %v34_v31 = vld [vmem:[#allocation2 + $0x10] sm:$0xff] }
  0x11   :  { %95 = vmatpush.msra.mxu1 %v53_v8  ;;  %v31_v30 = vld [vmem:[%s248_s0] sm:$0xff]  ;;  %s215_s0 = smov [#allocation5]  }
  0x12   :  { %75 = vmatpush.msra.mxu0 %v52_v13  ;;  %v32_v32 = vld [vmem:[#allocation2] sm:$0xff] }
  0x13   :  { %96 = vmatpush.msra.mxu1 %v51_v10  ;;  %v64_v33 = vld [vmem:[%s250_s2] sm:$0x3]  ;;  %s139_s2 = sshll.u32 %s215_s0, 4  ;;  %s140_s2 = int_to_ptr.vmem [resolvable:$true] %s139_s2 }
  0x14   :  { %76 = vmatpush.msra.mxu0 %v50_v15  ;;  %v67_v34 = vperm.slane %v64_v33, 1  ;;  %v66_v40 = vperm.slane %v64_v33, 0 }
  0x15   :  { %97 = vmatpush.msra.mxu1 %v49_v12 }
  0x16   :  { %77 = vmatpush.msra.mxu0 %v48_v17 }
  0x17   :  { %98 = vmatpush.msra.mxu1 %v47_v14 }
  0x18   :  { %78 = vmatpush.msra.mxu0 %v46_v19 }
  0x19   :  { %99 = vmatpush.msra.mxu1 %v45_v16 }
  0x1a   :  { %79 = vmatpush.msra.mxu0 %v44_v21 }
  0x1b   :  { %100 = vmatpush.msra.mxu1 %v43_v18 }
  0x1c   :  { %80 = vmatpush.msra.mxu0 %v42_v23 }
  0x1d   :  { %101 = vmatpush.msra.mxu1 %v41_v20 }
  0x1e   :  { %81 = vmatpush.msra.mxu0 %v40_v25 }
  0x1f   :  { %102 = vmatpush.msra.mxu1 %v39_v22 }
  0x20   :  { %82 = vmatpush.msra.mxu0 %v38_v27 }
  0x21   :  { %103 = vmatpush.msra.mxu1 %v37_v24 }
  0x22   :  { %83 = vmatpush.msra.mxu0 %v36_v29 }
  0x23   :  { %104 = vmatpush.msra.mxu1 %v35_v26 }
  0x24   :  { %84 = vmatpush.msra.mxu0 %v34_v31 }
  0x25   :  { %105 = vmatpush.msra.mxu1 %v33_v28 }
  0x26   :  { %106 = vmatmul.f32.vlgmr.msra.gmra.mxu1 %v31_v30  ;;  %85 = vmatpush.msra.mxu0 %v32_v32 }
  0x27   :  { %86 = vmatmul.f32.vlgmr.msra.gmra.mxu0 %v31_v30 }
  0xa3   :  { %v107_v35 = vpop.f32.mrf.mxu1 }
  0xa4   :  { %v108_v36 = vadd.f32 %v107_v35, %v67_v34  ;;  %v87_v41 = vpop.f32.mrf.mxu0 }
  0xa5   :  { %v88_v42 = vadd.f32 %v87_v41, %v66_v40 }
  0xa6   :  { %v151_v37 = vmul.f32 -1.442695, %v108_v36 }
  0xa7   :  { %v110_v46 = vmax.f32 %v88_v42, 0.0 }
  0xa8   :  { %156 = vpow2.f32 %v151_v37 }
  0xa9   :  { %v130_v51 = vsub.f32 %v110_v46, %v31_v30 }
  0xae   :  { %v157_v38 = vpop.eup %156 }
  0xaf   :  { %v114_v39 = vadd.f32 1.0, %v157_v38 }
  0xb1   :  { %158 = vrcp.f32 %v114_v39  ;;  %v126_v47 = vand.u32 2147483648, %v114_v39  ;;  %v124_v49 = vand.u32 2147483647, %v114_v39  ;;  %vm120_vm1 = vweird.f32 %v114_v39 }
  0xb3   :  { %v127_v52 = vor.u32 1.1754944e-38, %v126_v47  ;;  %vm125_vm3 = vcmp.eq.f32.partialorder %v124_v49, 8.507059e+37 }
  0xb7   :  { %v159_v43 = vpop.eup %158 }
  0xb8   :  { %v116_v44 = vmul.f32 %v159_v43, %v114_v39  ;;  %vm121_vm0 = vweird.f32 %v159_v43 }
  0xb9   :  { %vm122_vm2 = vmor %vm120_vm1, %vm121_vm0 }
  0xba   :  { %v117_v45 = vsub.f32 1.0, %v116_v44 }
  0xbc   :  { %v118_v48 = vmul.f32 %v159_v43, %v117_v45 }
  0xbe   :  { %v119_v50 = vadd.f32 %v159_v43, %v118_v48 }
  0xc0   :  { %v123_v53 = vsel %vm122_vm2, %v159_v43, %v119_v50 }
  0xc1   :  { %v128_v54 = vsel %vm125_vm3, %v127_v52, %v123_v53 }
  0xc2   :  { %v131_v55 = vmul.f32 %v130_v51, %v128_v54 }
  0xc4   :  { %v132_v56 = vadd.f32 %v131_v55, %v31_v30 }
  0xc6   :  { %133 = vst [vmem:[#allocation5] sm:$0xff] %v132_v56 }
  0xc7   :  { %144 = dma.vmem_to_hbm [thread:$0]  %s140_s2, 128, %s142_s24, [#allocation4]  }
  0xc8   :  { %210 = dma.done.wait [#allocation4], 128  }
  0xc9   :  { %211 = vsyncadd [#allocation4], 4294967168 }
  0xca   :  { %149 = vsyncpa [#allocation3], 1 }
  0xcb   :  { %150 = vsyncpa [#allocation4], 1 }

</bundles_post_ra>
